<compile_context>
chip_gen: v7x
topology: tpu7x:2x2x1
jax: 0.10.0
libtpu: 0.0.40
codegen_flags: <defaults>
</compile_context>

<pallas_src>
import functools

import jax
import jax.numpy as jnp
from jax.experimental import pallas as pl
from jax.experimental.pallas import tpu as pltpu


# ---------------------------------------------------------------------------
# Pass 1: tiled linear projection  y = (x @ W + b) * scale
# ---------------------------------------------------------------------------
def _linear_kernel(x_ref, w_ref, b_ref, o_ref, *, scale, compute_dtype):
    x = x_ref[0].astype(compute_dtype)                          # (tn, C)
    y = jnp.dot(x, w_ref[...], preferred_element_type=jnp.float32)
    y = y + b_ref[...]                                          # f32 bias add
    if scale != 1.0:
        y = y * scale                                           # fold softmax scale
    o_ref[0] = y.astype(o_ref.dtype)


def _project(x, W, b, *, scale=1.0, block_n=512, compute_dtype,
             vmem_limit_bytes):
    """Project a (B, N, C) tensor once: each input row touched exactly once."""
    B, N, C = x.shape
    F = W.shape[1]
    tn = min(block_n, N)
    assert N % tn == 0, "sequence length must divide the projection block"

    W_c = W.astype(compute_dtype)            # weights streamed in MXU dtype
    b2 = b.reshape(1, F).astype(jnp.float32)  # lane-dense f32 bias

    kernel = functools.partial(_linear_kernel, scale=scale,
                               compute_dtype=compute_dtype)
    return pl.pallas_call(
        kernel,
        out_shape=jax.ShapeDtypeStruct((B, N, F), compute_dtype),
        grid_spec=pltpu.PrefetchScalarGridSpec(
            num_scalar_prefetch=0,
            grid=(B, N // tn),
            in_specs=[
                pl.BlockSpec((1, tn, C), lambda bi, i: (bi, i, 0)),   # x tile
                # Constant-index weight/bias: single-buffered, DMA'd once.
                pl.BlockSpec((C, F), lambda bi, i: (0, 0),
                             pipeline_mode=pl.Buffered(1)),
                pl.BlockSpec((1, F), lambda bi, i: (0, 0),
                             pipeline_mode=pl.Buffered(1)),
            ],
            out_specs=pl.BlockSpec((1, tn, F), lambda bi, i: (bi, i, 0)),
        ),
        compiler_params=pltpu.CompilerParams(
            dimension_semantics=("parallel", "parallel"),
            vmem_limit_bytes=vmem_limit_bytes),
    )(x, W_c, b2)


# ---------------------------------------------------------------------------
# Pass 2: flash-style online-softmax attention over projected tensors.
#   qp  : (B, Nq, H)  -- scale already folded in
#   kpt : (B, H, Nk)  -- projected K, pre-transposed
#   vp  : (B, Nk, C)
# ---------------------------------------------------------------------------
def _flash_kernel(qp_ref, kpt_ref, vp_ref, o_ref,
                  m_scr, l_scr, acc_scr, *, approx_recip):
    kv = pl.program_id(2)

    @pl.when(kv == 0)
    def _():
        m_scr[...] = jnp.full_like(m_scr, -jnp.inf)
        l_scr[...] = jnp.zeros_like(l_scr)
        acc_scr[...] = jnp.zeros_like(acc_scr)

    qp = qp_ref[0]                                              # (tq, H)
    kpt = kpt_ref[0]                                            # (H, tk)
    vp = vp_ref[0]                                              # (tk, C)

    # Scores: plain MXU matmul (no per-step transpose), f32 accumulation.
    s = jnp.dot(qp, kpt, preferred_element_type=jnp.float32)    # (tq, tk)

    # Online softmax update -- all stats and elementwise math in f32.
    m_prev = m_scr[...]                                         # (tq, 1)
    m_new = jnp.maximum(m_prev, jnp.max(s, axis=-1, keepdims=True))
    alpha = jnp.exp(m_prev - m_new)                             # (tq, 1)
    p = jnp.exp(s - m_new)                                      # (tq, tk) f32
    l_scr[...] = alpha * l_scr[...] + jnp.sum(p, axis=-1, keepdims=True)
    acc_scr[...] = alpha * acc_scr[...] + jnp.dot(
        p.astype(vp.dtype), vp, preferred_element_type=jnp.float32)
    m_scr[...] = m_new

    @pl.when(kv == pl.num_programs(2) - 1)
    def _():
        inv_l = pl.reciprocal(l_scr[...], approx=approx_recip)  # EUP slot
        o_ref[0] = (acc_scr[...] * inv_l).astype(o_ref.dtype)


def cross_attention(q, k, v, W_q, b_q, W_k, b_k, W_v, b_v, *,
                    block_q=256, block_k=512, block_proj=512,
                    compute_dtype=jnp.bfloat16,
                    vmem_limit_bytes=48 * 1024 * 1024):
    B, Nq, C = q.shape
    _, Nk, _ = k.shape
    H = W_q.shape[1]
    scale = float(H) ** -0.5
    compute_dtype = jnp.dtype(compute_dtype)

    # ---- Pass 1: projections (each of q/k/v projected exactly once). ----
    qp = _project(q, W_q, b_q, scale=scale, block_n=block_proj,
                  compute_dtype=compute_dtype,
                  vmem_limit_bytes=vmem_limit_bytes)             # (B, Nq, H)
    kp = _project(k, W_k, b_k, block_n=block_proj,
                  compute_dtype=compute_dtype,
                  vmem_limit_bytes=vmem_limit_bytes)             # (B, Nk, H)
    vp = _project(v, W_v, b_v, block_n=block_proj,
                  compute_dtype=compute_dtype,
                  vmem_limit_bytes=vmem_limit_bytes)             # (B, Nk, C)
    # Cheap one-shot relayout so the flash inner loop needs no transpose.
    kpt = jnp.swapaxes(kp, 1, 2)                                 # (B, H, Nk)

    # ---- Pass 2: flash attention. ----
    tq = min(block_q, Nq)
    tk = min(block_k, Nk)
    assert Nq % tq == 0 and Nk % tk == 0, "seq lengths must divide block sizes"
    grid = (B, Nq // tq, Nk // tk)

    kernel = functools.partial(
        _flash_kernel,
        approx_recip=(compute_dtype != jnp.dtype(jnp.float32)))

    return pl.pallas_call(
        kernel,
        out_shape=jax.ShapeDtypeStruct((B, Nq, C), q.dtype),
        grid_spec=pltpu.PrefetchScalarGridSpec(
            num_scalar_prefetch=0,
            grid=grid,
            in_specs=[
                pl.BlockSpec((1, tq, H), lambda b, i, j: (b, i, 0)),   # qp
                pl.BlockSpec((1, H, tk), lambda b, i, j: (b, 0, j)),   # kp^T
                pl.BlockSpec((1, tk, C), lambda b, i, j: (b, j, 0)),   # vp
            ],
            out_specs=pl.BlockSpec((1, tq, C), lambda b, i, j: (b, i, 0)),
            scratch_shapes=[
                pltpu.VMEM((tq, 1), jnp.float32),   # running max
                pltpu.VMEM((tq, 1), jnp.float32),   # running denom
                pltpu.VMEM((tq, C), jnp.float32),   # output accumulator
            ],
        ),
        compiler_params=pltpu.CompilerParams(
            dimension_semantics=("parallel", "parallel", "arbitrary"),
            vmem_limit_bytes=vmem_limit_bytes),
    )(qp, kpt, vp)


# ---------------------------------------------------------------------------
# Reference + test harness
# ---------------------------------------------------------------------------
def reference(q, k, v, W_q, b_q, W_k, b_k, W_v, b_v):
    H = W_q.shape[1]
    scale = float(H) ** -0.5
    query = q @ W_q + b_q
    key = k @ W_k + b_k
    value = v @ W_v + b_v
    dots = jnp.einsum("bqh,bkh->bqk", query, key) * scale
    attn = jax.nn.softmax(dots, axis=-1)
    return jnp.einsum("bqk,bkc->bqc", attn, value)


def _make_params(key, in_channels, hidden_size):
    kwq, kwk, kwv, kbq, kbk, kbv = jax.random.split(key, 6)
    # Match the module's weight init (normal with the given stds); biases use
    # nn.Linear's default uniform(+-1/sqrt(fan_in)).
    W_q = jax.random.normal(kwq, (in_channels, hidden_size), jnp.float32) * (
        (2.0 / hidden_size) ** 0.5)
    W_k = jax.random.normal(kwk, (in_channels, hidden_size), jnp.float32) * (
        (2.0 / hidden_size) ** 0.5)
    W_v = jax.random.normal(kwv, (in_channels, in_channels), jnp.float32) * (
        (2.0 / in_channels) ** 0.5)
    bound = 1.0 / (in_channels ** 0.5)
    b_q = jax.random.uniform(kbq, (hidden_size,), jnp.float32, -bound, bound)
    b_k = jax.random.uniform(kbk, (hidden_size,), jnp.float32, -bound, bound)
    b_v = jax.random.uniform(kbv, (in_channels,), jnp.float32, -bound, bound)
    return W_q, b_q, W_k, b_k, W_v, b_v


def _run_case(key, B, Nq, Nk, C, H, *, compute_dtype, atol, rtol, **kw):
    kq, kk, kv_, kp = jax.random.split(key, 4)
    q = jax.random.normal(kq, (B, Nq, C), dtype=jnp.float32)
    k = jax.random.normal(kk, (B, Nk, C), dtype=jnp.float32)
    v = jax.random.normal(kv_, (B, Nk, C), dtype=jnp.float32)
    W_q, b_q, W_k, b_k, W_v, b_v = _make_params(kp, C, H)

    out = cross_attention(q, k, v, W_q, b_q, W_k, b_k, W_v, b_v,
                          compute_dtype=compute_dtype, **kw)
    out = jax.block_until_ready(out)

    ref = reference(q, k, v, W_q, b_q, W_k, b_k, W_v, b_v)
    err = jnp.max(jnp.abs(out - ref))
    assert jnp.allclose(out, ref, atol=atol, rtol=rtol), (
        f"mismatch: max abs err {err}")


if __name__ == "__main__":
    key = jax.random.PRNGKey(0)
    k1, k2, k3 = jax.random.split(key, 3)

    # Structural correctness check in f32 (exact reciprocal), tight tolerance.
    _run_case(k1, B=2, Nq=8, Nk=8, C=32, H=32,
              compute_dtype=jnp.float32, atol=1e-5, rtol=1e-5)

    # Default performance path: bf16 MXU operands / f32 accumulation,
    # multi-kv-tile online-softmax path exercised (2 kv steps per q tile).
    _run_case(k2, B=2, Nq=256, Nk=256, C=32, H=32,
              compute_dtype=jnp.bfloat16, atol=1e-1, rtol=1e-1,
              block_q=128, block_k=128)

    # Default (larger) tile sizes on a slightly longer sequence.
    _run_case(k3, B=2, Nq=512, Nk=512, C=32, H=32,
              compute_dtype=jnp.bfloat16, atol=1e-1, rtol=1e-1)

    print("KERNEL_OK")
</pallas_src>

<mosaic_0001>
module attributes {stable_mosaic.version = 11 : i64} {
  func.func @_linear_kernel(%arg0: i32, %arg1: i32, %arg2: memref<1x8x32xf32, #tpu.memory_space<vmem>>, %arg3: memref<32x32xf32, #tpu.memory_space<vmem>>, %arg4: memref<1x32xf32, #tpu.memory_space<vmem>>, %arg5: memref<1x8x32xf32, #tpu.memory_space<vmem>>) attributes {dimension_semantics = [#tpu.dimension_semantics<parallel>, #tpu.dimension_semantics<parallel>], iteration_bounds = array<i64: 2, 1>, scalar_prefetch = 0 : i64, scratch_operands = 0 : i64, tpu.core_type = #tpu.core_type<tc>, window_params = [{transform_indices = @transform_0, window_bounds = array<i64: 1, 8, 32>}, {pipeline_mode = #tpu.pipeline_mode<synchronous>, transform_indices = @transform_1, window_bounds = array<i64: 32, 32>}, {pipeline_mode = #tpu.pipeline_mode<synchronous>, transform_indices = @transform_2, window_bounds = array<i64: 1, 32>}, {transform_indices = @transform_3, window_bounds = array<i64: 1, 8, 32>}]} {
    %c0 = arith.constant 0 : index
    %c0_0 = arith.constant 0 : index
    %c0_1 = arith.constant 0 : index
    %0 = vector.load %arg2[%c0, %c0_0, %c0_1] : memref<1x8x32xf32, #tpu.memory_space<vmem>>, vector<1x8x32xf32>
    %1 = vector.shape_cast %0 : vector<1x8x32xf32> to vector<8x32xf32>
    %c0_2 = arith.constant 0 : index
    %c0_3 = arith.constant 0 : index
    %2 = vector.load %arg3[%c0_2, %c0_3] : memref<32x32xf32, #tpu.memory_space<vmem>>, vector<32x32xf32>
    %cst = arith.constant dense<0.000000e+00> : vector<8x32xf32>
    %3 = tpu.matmul %1, %2, %cst {dimension_numbers = #tpu.dot_dimension_numbers<[1], [0], [0], [1], [0, 0, 1, 1], [], []>} : vector<8x32xf32>, vector<32x32xf32>, vector<8x32xf32> -> vector<8x32xf32>
    %c0_4 = arith.constant 0 : index
    %c0_5 = arith.constant 0 : index
    %4 = vector.load %arg4[%c0_4, %c0_5] : memref<1x32xf32, #tpu.memory_space<vmem>>, vector<1x32xf32>
    %5 = vector.broadcast %4 : vector<1x32xf32> to vector<8x32xf32>
    %6 = arith.addf %3, %5 : vector<8x32xf32>
    %cst_6 = arith.constant 0.176776692 : f32
    %7 = vector.broadcast %cst_6 : f32 to vector<8x32xf32>
    %8 = arith.mulf %6, %7 : vector<8x32xf32>
    %c0_7 = arith.constant 0 : index
    %c0_8 = arith.constant 0 : index
    %c0_9 = arith.constant 0 : index
    %9 = vector.load %arg5[%c0_7, %c0_8, %c0_9] : memref<1x8x32xf32, #tpu.memory_space<vmem>>, vector<1x8x32xf32>
    %10 = vector.shape_cast %9 : vector<1x8x32xf32> to vector<8x32xf32>
    %11 = vector.shape_cast %8 : vector<8x32xf32> to vector<1x8x32xf32>
    tpu.vector_store %arg5[%c0_7, %c0_8, %c0_9], %11 {strides = array<i32>} : memref<1x8x32xf32, #tpu.memory_space<vmem>>, vector<1x8x32xf32>,
    return
  }
  func.func @transform_0(%arg0: i32, %arg1: i32) -> (i32, i32, i32) {
    %c0_i32 = arith.constant 0 : i32
    %c0_i32_0 = arith.constant 0 : i32
    return %arg0, %arg1, %c0_i32 : i32, i32, i32
  }
  func.func @transform_1(%arg0: i32, %arg1: i32) -> (i32, i32) {
    %c0_i32 = arith.constant 0 : i32
    %c0_i32_0 = arith.constant 0 : i32
    %c0_i32_1 = arith.constant 0 : i32
    return %c0_i32, %c0_i32_0 : i32, i32
  }
  func.func @transform_2(%arg0: i32, %arg1: i32) -> (i32, i32) {
    %c0_i32 = arith.constant 0 : i32
    %c0_i32_0 = arith.constant 0 : i32
    %c0_i32_1 = arith.constant 0 : i32
    return %c0_i32, %c0_i32_0 : i32, i32
  }
  func.func @transform_3(%arg0: i32, %arg1: i32) -> (i32, i32, i32) {
    %c0_i32 = arith.constant 0 : i32
    %c0_i32_0 = arith.constant 0 : i32
    return %arg0, %arg1, %c0_i32 : i32, i32, i32
  }
}

</mosaic_0001>

<bundles_post_ra>
// kernel: tpu_custom_call.1
= control target key start
LH: loop header
LB: loop body
LE: loop exit
PB: predicated region body
PF: predicated region fallthrough
CT: control target
= control target key end

     0   :  { %8 = vsyncpa [#allocation3], 0  ;;  %s919_s0 = inlined_call_operand.hbm [shape: f32[2,8,32], index: 0, kind: input, shape index: {}]   ;;  %s920_s1 = inlined_call_operand.hbm [shape: f32[32,32], index: 1, kind: input, shape index: {}]   ;;  %s921_s2 = inlined_call_operand.vmem [shape: f32[1,32], index: 2, kind: input, shape index: {}]   ;;  %s922_s3 = inlined_call_operand.hbm [shape: f32[2,8,32], index: 3, kind: output, shape index: {}]  }
   0x1   :  { %10 = vsyncpa [#allocation3 + $0x1], 0 }
   0x2   :  { %11 = vsyncpa [#allocation6], 0 }
   0x3   :  { %12 = vsyncpa [#allocation4], 0 }
   0x4   :  { %14 = vsyncpa [#allocation4 + $0x1], 0  ;;  %s702_s12 = smov 0   ;;  %s704_s13 = smov 0  }
   0x5   :  { %s706_s14 = smov 0   ;;  %s708_s15 = smov 0  }
   0x6   :  { %s710_s16 = smov 0   ;;  %s712_s17 = smov 0  }
   0x7 LB: > { %s411_s18 = sadd.s32 4294967295, %s672_s17   ;;  %s412_s19 = sadd.s32 4294967294, %s672_s17   ;;  %s672_s17 = sphi %s712_s17, %s20_s17   ;;  %s668_s16 = sphi %s710_s16, %s946_s16   ;;  %s664_s15 = sphi %s708_s15, %s945_s15   ;;  %s660_s14 = sphi %s706_s14, %s944_s14   ;;  %s656_s13 = sphi %s704_s13, %s943_s13   ;;  %s652_s12 = sphi %s702_s12, %s942_s12  }
   0x8   : > { %p54_p0 = scmp.ne.s32.totalorder %s656_s13, %s652_s12  ;;  %p736_p1 = scmp.eq.s32.totalorder %s411_s18, 0 }
   0x9   : > { %p740_p2 = scmp.eq.s32.totalorder %s411_s18, 1  ;;  %p128_p3 = scmp.eq.s32.totalorder %s412_s19, 1 }
   0xa   : > { %s927_s20 = scalar_select %p736_p1, 1, 0 }
   0xb   : > { %s928_s21 = scalar_select %p740_p2, 1, 0 }
   0xc   : > { %p746_p4 = por %p736_p1, %p54_p0  ;;  %p413_p5 = scmp.ge.s32.totalorder %s672_s17, 1 }
   0xd   : > { %p751_p6 = por %p128_p3, %p54_p0  ;;  %p135_p7 = scmp.lt.s32.totalorder %s672_s17, 3 }
   0xe   : > { %s929_s22 = scalar_select %p746_p4, 1, 0 }
   0xf   : > { %s930_s23 = scalar_select %p751_p6, 1, 0 }
  0x10   : > { %p756_p8 = pnand %p413_p5, %p135_p7  ;;  %s674_s25 = smov [#allocation5]  }
  0x11   : > { %s147_s26 = sshll.u32 %s674_s25, 4  ;;  %s32_s28 = sadd.s32 1, %s668_s16  ;;  %s148_s26 = int_to_ptr.vmem [resolvable:$true] %s147_s26 }
  0x12   : > { %s931_s24 = scalar_select %p756_p8, 1, 0 }
  0x13   : > { %p458_p9 = pneg %p756_p8  ;;  %s528_s4 = scalar_lea.hbm %s920_s1, 512 }
  0x14   : > { %p529_p12 = scmp.ne.s32.totalorder %s920_s1, %s528_s4  ;;  %p535_p5 = scmp.lt.u32.totalorder %s528_s4, %s920_s1 }
  0x15   : > { %p765_p11 = pnand %p458_p9, %p736_p1 }
  0x17   : > { %p530_p13 = pneg %p765_p11 }
  0x19   : > { %p531_p0 = pnand %p530_p13, %p529_p12 }
  0x1b   : > { %p532_p3 = pneg %p531_p0 }
  0x1d   : > { %p537_p7 = pnand %p535_p5, %p532_p3 }
  0x1f   : > { %540 = shalt.err (!%p537_p7)
}
  0x20   : > { %s541_s9 = scalar_lea.vmem %s148_s26, 512  ;;  %p549_p1 = scmp.lt.s32.totalorder %s148_s26, %s148_s26 }
  0x21   : > { %p542_p9 = scmp.ne.s32.totalorder %s148_s26, %s541_s9  ;;  %p550_p4 = scmp.lt.s32.totalorder %s541_s9, %s541_s9 }
  0x23   : > { %p544_p10 = pnand %p542_p9, %p530_p13  ;;  %p551_p8 = por %p550_p4, %p549_p1 }
  0x25   : > { %p545_p6 = pneg %p544_p10 }
  0x27   : > { %p552_p2 = pnand %p551_p8, %p545_p6 }
  0x29   : > { %555 = shalt.err (!%p552_p2)
}
  0x2a   : > { %s675_s10 = smov 128   ;;  %s676_s11 = smov 8  }
  0x2b   : > { %461 = dma.hbm_to_vmem [thread:$0]  (!%p765_p11), %s920_s1, 512, %s148_s26, [#allocation6], %s675_s10, %s675_s10, %s676_s11  }
  0x2c   : > { %p34_p1 = scmp.ge.s32.totalorder %s32_s28, 2  ;;  %s41_s25 = sadd.s32 1, %s660_s14 }
  0x2d   : > { %p48_p2 = scmp.ne.s32.totalorder %s660_s14, %s656_s13  ;;  %p49_p4 = scmp.eq.s32.totalorder %s672_s17, 0 }
  0x2e   : > { %s948_s28 = smov (%p34_p1, %s32_s28), 0  ;;  %p934_p8 = scmp.ne.s32.totalorder %s928_s21, 0 }
  0x2f   : > { %p792_p6 = por %p49_p4, %p48_p2  ;;  %s36_s27 = ssub.s32 %s668_s16, %s948_s28 }
  0x30   : > { %p798_p10 = por %p934_p8, %p48_p2  ;;  %p471_p12 = scmp.lt.s32.totalorder %s672_s17, 2 }
  0x31   : > { %p39_p11 = scmp.eq.s32.totalorder %s36_s27, 0  ;;  %s164_s26 = sand.u32 1, %s660_s14  }
  0x32   : > { %s416_s4 = sshll.u32 %s164_s26, 3  ;;  %s417_s6 = sshll.u32 %s668_s16, 7 }
  0x33   : > { %s807_s5 = scalar_select %p39_p11, %s660_s14, %s41_s25  }
  0x34   : > { %s813_s9 = scalar_lea.hbm %s919_s0, %s417_s6  ;;  %s168_s21 = scalar_lea.vmem [#allocation2], %s416_s4 }
  0x35   : > { %s176_s10 = sshll.u32 %s168_s21, 4  ;;  %p819_p13 = pnand %p471_p12, %p792_p6  ;;  %s815_s10 = int_to_ptr.vmem [resolvable:$true] %s176_s10 }
  0x36   : > { %s165_s18 = scalar_lea.sflag [#allocation3], %s164_s26  ;;  %s556_s19 = scalar_lea.hbm %s813_s9, 128 }
  0x37   : > { %p557_p0 = scmp.ne.s32.totalorder %s813_s9, %s556_s19  ;;  %p558_p3 = pneg %p819_p13 }
  0x38   : > { %s561_s4 = scalar_lea.hbm %s919_s0, 256  ;;  %p562_p9 = scmp.lt.u32.totalorder %s813_s9, %s919_s0 }
  0x39   : > { %p559_p5 = pnand %p558_p3, %p557_p0  ;;  %p563_p1 = scmp.lt.u32.totalorder %s561_s4, %s556_s19 }
  0x3a   : > { %p565_p4 = scmp.lt.u32.totalorder %s556_s19, %s813_s9 }
  0x3b   : > { %p560_p7 = pneg %p559_p5  ;;  %p564_p2 = por %p563_p1, %p562_p9 }
  0x3d   : > { %p566_p6 = por %p565_p4, %p564_p2 }
  0x3f   : > { %p567_p8 = pnand %p566_p6, %p560_p7 }
  0x41   : > { %570 = shalt.err (!%p567_p8)
}
  0x42   : > { %s571_s26 = scalar_lea.vmem %s815_s10, 128  ;;  %s677_s7 = smov [#allocation2]  }
  0x43   : > { %p572_p12 = scmp.ne.s32.totalorder %s815_s10, %s571_s26  ;;  %s576_s8 = sshll.u32 %s677_s7, 4  ;;  %s577_s8 = int_to_ptr.vmem [resolvable:$false] %s576_s8 }
  0x44   : > { %s578_s21 = scalar_lea.vmem %s577_s8, 256  ;;  %p579_p5 = scmp.lt.s32.totalorder %s815_s10, %s577_s8 }
  0x45   : > { %p574_p11 = pnand %p572_p12, %p558_p3  ;;  %p580_p9 = scmp.lt.s32.totalorder %s578_s21, %s571_s26 }
  0x47   : > { %p575_p0 = pneg %p574_p11  ;;  %p581_p1 = por %p580_p9, %p579_p5 }
  0x49   : > { %p582_p2 = pnand %p581_p1, %p575_p0 }
  0x4b   : > { %585 = shalt.err (!%p582_p2)
}
  0x4c   : > { %465 = dma.hbm_to_vmem [thread:$0]  (!%p819_p13), %s813_s9, 128, %s815_s10, %s165_s18  }
  0x4d   : > { %p937_p7 = scmp.ne.s32.totalorder %s931_s24, 0 }
  0x4e   : > { %s851_s19 = sand.u32 (!%p937_p7), 1, %s656_s13   ;;  %p938_p3 = scmp.ne.s32.totalorder (!%p937_p7), %s929_s22, 0 }
  0x4f   : > { %185 = sbr.rel (%p937_p7) target bundleno = 331 (0x14b), region = 32  ;;  %s419_s25 = sshll.u32 (!%p937_p7), %s851_s19, 3 }
  0x50   : > { %s188_s27 = scalar_lea.sflag (!%p937_p7), [#allocation3], %s851_s19  ;;  %s191_s4 = scalar_lea.vmem (!%p937_p7), [#allocation2], %s419_s25 }
  0x56   : > { %639 = dma.done.wait (%p938_p3), %s188_s27, 128  }
  0x57   : > { %641 = vsyncadd (%p938_p3), %s188_s27, 4294967168  ;;  %p939_p4 = scmp.ne.s32.totalorder %s927_s20, 0 }
  0x59   : > { %643 = dma.done.wait (%p939_p4), [#allocation6], 512  }
  0x5a   : > { %645 = vsyncadd (%p939_p4), [#allocation6], 4294966784  ;;  %v678_v0 = vmov 0.0|0.0   ;;  %vm679_vm0 = vmmov 0   ;;  %v680_v1 = vmov 0.0   ;;  %v219_v2 = vld [vmem:[#allocation5] sm:$0xff] }
  0x5b   : > { %444 = vmatprep.subr.bf16.mxu0 %v678_v0  ;;  %441 = vmatprep.mubr.msk.f32.mxu0 %vm679_vm0, %v680_v1  ;;  %v220_v3 = vld [vmem:[#allocation5 + $0x8] sm:$0xff]  ;;  %v221_v4 = vld [vmem:[#allocation5 + $0x10] sm:$0xff]  ;;  %v222_v6 = vld [vmem:[#allocation5 + $0x18] sm:$0xff]  ;;  %vm230_vm1 = vcmask 261120   ;;  %s425_s24 = sshll.u32 %s664_s15, 7  ;;  %s217_s9 = scalar_lea.vmem [#allocation7], %s419_s25 }
  0x5c   : > { %v445_v5 = vpack.c.bf16 %v220_v3, %v219_v2  ;;  %v448_v7 = vpack.c.bf16 %v222_v6, %v221_v4  ;;  %v218_v8 = vld [vmem:[%s191_s4] sm:$0xff]  ;;  %s321_s10 = sshll.u32 %s217_s9, 4  ;;  %s870_s29 = scalar_lea.hbm %s922_s3, %s425_s24  ;;  %s872_s10 = int_to_ptr.vmem [resolvable:$true] %s321_s10 }
  0x5d   : > { %v422_v9 = vld [vmem:[%s921_s2] ss:$0 sm:$0xff]  ;;  %s307_s6 = scalar_lea.sflag [#allocation4], %s851_s19  ;;  %s586_s26 = scalar_lea.vmem %s872_s10, 128 }
  0x5e   : > { %446 = vmatpush3.bf16.msra.mxu0 %v445_v5  ;;  %p587_p13 = scmp.ne.s32.totalorder %s872_s10, %s586_s26  ;;  %s681_s15 = smov [#allocation7]  }
  0x5f   : > { %447 = vmatprep.subr.bf16.mxu0 %v678_v0  ;;  %s590_s7 = sshll.u32 %s681_s15, 4  ;;  %s591_s7 = int_to_ptr.vmem [resolvable:$false] %s590_s7 }
  0x60   : > { %p588_p6 = pnand %p587_p13, %p798_p10  ;;  %s592_s8 = scalar_lea.vmem %s591_s7, 256 }
  0x61   : > { %p593_p12 = scmp.lt.s32.totalorder %s872_s10, %s591_s7  ;;  %p594_p11 = scmp.lt.s32.totalorder %s592_s8, %s586_s26 }
  0x62   : > { %449 = vmatpush3.bf16.msra.mxu0 %v448_v7  ;;  %p589_p8 = pneg %p588_p6 }
  0x63   : > { %p595_p0 = por %p594_p11, %p593_p12 }
  0x65   : > { %442 = vmatmul.mubr.msk.f32.vlgmr.msra.gmra.mrb[0].mxu0 %vm230_vm1, %v218_v8  ;;  %p596_p5 = pnand %p595_p0, %p589_p8 }
 0x138   : > { %v300_v10 = vpop.f32.mrb[0].mxu0 }
 0x139   : > { %v301_v11 = vadd.f32 %v422_v9, %v300_v10  ;;  %v443_v12 = vpop.f32.mrb[1].mxu0 }
 0x13b   : > { %v304_v13 = vmul.f32 0.17677669, %v301_v11 }
 0x13d   : > { %305 = vst.msk [vmem:[%s217_s9] sm:$0xff] %vm230_vm1, %v304_v13 }
 0x13e   : > { %599 = shalt.err (!%p596_p5)
}
 0x13f   : > { %s600_s21 = scalar_lea.hbm %s870_s29, 128  ;;  %s604_s27 = scalar_lea.hbm %s922_s3, 256 }
 0x140   : > { %p601_p9 = scmp.ne.s32.totalorder %s870_s29, %s600_s21  ;;  %p605_p7 = scmp.lt.u32.totalorder %s870_s29, %s922_s3 }
 0x141   : > { %p606_p3 = scmp.lt.u32.totalorder %s604_s27, %s600_s21  ;;  %p608_p13 = scmp.lt.u32.totalorder %s600_s21, %s870_s29 }
 0x142   : > { %p602_p1 = pnand %p601_p9, %p798_p10 }
 0x143   : > { %p607_p4 = por %p606_p3, %p605_p7 }
 0x144   : > { %p603_p2 = pneg %p602_p1 }
 0x145   : > { %p609_p6 = por %p608_p13, %p607_p4 }
 0x147   : > { %p610_p8 = pnand %p609_p6, %p603_p2 }
 0x149   : > { %613 = shalt.err (!%p610_p8)
}
 0x14a   : > { %456 = dma.vmem_to_hbm [thread:$0]  (%p798_p10), %s872_s10, 128, %s870_s29, %s307_s6  }
 0x14b PF: > { %s333_s22 = sand.u32 1, %s652_s12   ;;  %p940_p12 = scmp.ne.s32.totalorder %s930_s23, 0 }
 0x14c   : > { %p941_p11 = scmp.ge.s32.totalorder %s672_s17, 2  ;;  %s334_s24 = scalar_lea.sflag [#allocation4], %s333_s22 }
 0x14e   : > { %p467_p0 = pnand %p941_p11, %p940_p12 }
 0x150   : > { %647 = dma.done.wait (!%p467_p0), %s334_s24, 128  }
 0x151   : > { %649 = vsyncadd (!%p467_p0), %s334_s24, 4294967168  ;;  %s20_s17 = sadd.s32 1, %s672_s17   ;;  %s942_s12 = smov %s656_s13 }
 0x152   : > { %p17_p5 = scmp.ge.s32.totalorder %s20_s17, 4   ;;  %s943_s13 = smov %s660_s14 }
 0x153   : > { %s944_s14 = smov %s807_s5  ;;  %s945_s15 = smov %s668_s16 }
 0x154   : > { %s946_s16 = smov %s948_s28  ;;  %19 = sbr.rel (!%p17_p5) target bundleno = 7 (0x7), region = 81 }
 0x15b   :  { %339 = vsyncpa [#allocation3], 1 }
 0x15c   :  { %341 = vsyncpa [#allocation3 + $0x1], 1 }
 0x15d   :  { %342 = vsyncpa [#allocation6], 1 }
 0x15e   :  { %343 = vsyncpa [#allocation4], 1 }
 0x15f   :  { %345 = vsyncpa [#allocation4 + $0x1], 1 }

</bundles_post_ra>
